<compile_context>
chip_gen: v7x
topology: tpu7x:2x2x1
jax: 0.10.0
libtpu: 0.0.40
codegen_flags: <defaults>
</compile_context>

<pallas_src>
import functools

import jax
import jax.numpy as jnp
from jax.experimental import pallas as pl
from jax.experimental.pallas import tpu as pltpu


def _mlp_kernel(*refs, skip, fuse_skip, emit_feature, slope, compute_dtype,
                ew_dtype, hidden):
    """Fused 5-layer MLP on one (tm, d_in) row tile.

    refs (inputs then outputs, as passed by pallas_call):
      fuse_skip : x, w1x, b1, w2, b2, w3h, b3, w4, b4, w5, b5, out[, feat]
      skip      : x, w1,  b1, w2, b2, w3h, b3, w3x, w4, b4, w5, b5, out[, feat]
      plain     : x, w1,  b1, w2, b2, w3h, b3, w4, b4, w5, b5, out[, feat]
    """
    x_ref = refs[0]
    if fuse_skip:
        (w1x, b1, w2, b2, w3h, b3, w4, b4, w5, b5) = refs[1:11]
        rest = refs[11:]
        w1 = w3x = None
    elif skip:
        (w1, b1, w2, b2, w3h, b3, w3x, w4, b4, w5, b5) = refs[1:12]
        rest = refs[12:]
        w1x = None
    else:
        (w1, b1, w2, b2, w3h, b3, w4, b4, w5, b5) = refs[1:11]
        rest = refs[11:]
        w1x = w3x = None
    out_ref = rest[0]
    feat_ref = rest[1] if emit_feature else None

    x = x_ref[...]  # already in compute_dtype (cast once in the wrapper)

    def dot(a, w_ref):
        # MXU matmul: operands in compute_dtype (bf16 or f32), always f32 accumulation.
        return jnp.dot(a.astype(compute_dtype), w_ref[...],
                       preferred_element_type=jnp.float32)

    def lrelu(v):
        if 0.0 < slope < 1.0:
            # 2 VALU ops/vreg instead of cmp+mul+select; equivalent for 0 < slope < 1.
            return jnp.maximum(v, slope * v)
        return jnp.where(v > 0, v, slope * v)

    # ---- layer 1 (optionally fused with the x-part of layer 3) ----
    if fuse_skip:
        h1x = dot(x, w1x)                              # (tm, 2H), f32 acc
        a1 = h1x[:, :hidden].astype(ew_dtype)
        skip_add = h1x[:, hidden:]                     # f32, added into layer-3 pre-act
    else:
        a1 = dot(x, w1).astype(ew_dtype)
        skip_add = None
    h = lrelu(a1 + b1[...])

    # ---- layer 2 ----
    h = lrelu(dot(h, w2).astype(ew_dtype) + b2[...])

    # ---- layer 3 (skip connection) ----
    a3 = dot(h, w3h)
    if fuse_skip:
        a3 = a3 + skip_add
    elif skip:
        a3 = a3 + dot(x, w3x)                          # split matmul, lane-aligned
    h = lrelu(a3.astype(ew_dtype) + b3[...])

    # ---- layer 4 (feature = pre-ReLU output of lin4) ----
    h4 = dot(h, w4).astype(ew_dtype) + b4[...]
    if emit_feature:
        feat_ref[...] = h4.astype(feat_ref.dtype)
    h = lrelu(h4)

    # ---- layer 5 (bias add kept in f32; tiny d_out) ----
    out_ref[...] = (dot(h, w5) + b5[...]).astype(out_ref.dtype)


def _xavier_uniform(key, fan_in, fan_out, dtype=jnp.float32):
    # matches torch.nn.init.xavier_uniform_ on a (fan_out, fan_in) weight;
    # stored transposed as (fan_in, fan_out) for row-major x @ W.
    bound = (6.0 / (fan_in + fan_out)) ** 0.5
    return jax.random.uniform(key, (fan_in, fan_out), dtype=dtype,
                              minval=-bound, maxval=bound)


def init_params(key, d_in, d_out, hidden_size=256, skip=False):
    k1, k2, k3, k4, k5 = jax.random.split(key, 5)
    d3_in = hidden_size + d_in if skip else hidden_size
    return {
        "w1": _xavier_uniform(k1, d_in, hidden_size),
        "b1": jnp.zeros((1, hidden_size), jnp.float32),
        "w2": _xavier_uniform(k2, hidden_size, hidden_size),
        "b2": jnp.zeros((1, hidden_size), jnp.float32),
        "w3": _xavier_uniform(k3, d3_in, hidden_size),   # rows ordered [hidden ; d_in]
        "b3": jnp.zeros((1, hidden_size), jnp.float32),
        "w4": _xavier_uniform(k4, hidden_size, hidden_size),
        "b4": jnp.zeros((1, hidden_size), jnp.float32),
        "w5": _xavier_uniform(k5, hidden_size, d_out),
        "b5": jnp.zeros((1, d_out), jnp.float32),
    }


def _round_up(n, m):
    return ((n + m - 1) // m) * m


def _is_v5e_device():
    try:
        kind = jax.devices()[0].device_kind.lower()
    except Exception:
        return False
    return ("v5 lite" in kind) or ("v5e" in kind) or ("v5lite" in kind)


def lbs_pbs_forward(x, params, *, matrix=False, skip=False, return_feature=False,
                    tm=None, slope=0.01, use_bf16_matmul=True,
                    bf16_elementwise=None, feature_dtype=None,
                    vmem_limit_bytes=None):
    """x: [B, N, D] float32.  Returns [B, N, d_out] (or [B, N, d_out//3, 3] if matrix)."""
    n_batch, n_point, n_dim = x.shape
    hidden = params["w1"].shape[1]
    d_out = params["w5"].shape[1]
    M = n_batch * n_point
    out_dtype = x.dtype
    feat_dtype = out_dtype if feature_dtype is None else feature_dtype

    if M == 0:
        # TODO(synk): torch returns `input` unchanged for empty input; we return
        # correctly-shaped empty outputs instead.
        if matrix:
            out = jnp.zeros((n_batch, n_point, d_out // 3, 3), out_dtype)
        else:
            out = jnp.zeros((n_batch, n_point, d_out), out_dtype)
        if return_feature:
            return out, jnp.zeros((n_batch, n_point, hidden), feat_dtype)
        return out

    is_v5e = _is_v5e_device()
    compute_dtype = jnp.bfloat16 if use_bf16_matmul else jnp.float32
    if bf16_elementwise is None:
        bf16_elementwise = use_bf16_matmul and not is_v5e   # v5e has no bf16 VPU
    ew_dtype = jnp.bfloat16 if (bf16_elementwise and use_bf16_matmul) else jnp.float32

    # ---- row tiling: big tiles to amortize the ~0.35us per-grid-step overhead, but
    #      always keep >=2 grid steps so "parallel" can use both v7x TensorCores. ----
    if tm is None:
        tm = 512 if is_v5e else 1024
    row_align = 16 if use_bf16_matmul else 8
    tm_cap_half = _round_up(pl.cdiv(M, 2), row_align)
    tm_eff = max(row_align, min(tm, tm_cap_half, _round_up(M, row_align)))
    M_pad = _round_up(M, tm_eff)

    x_flat = x.reshape(M, n_dim).astype(compute_dtype)    # single wrapper-side cast
    if M_pad != M:
        x_flat = jnp.pad(x_flat, ((0, M_pad - M), (0, 0)))

    # ---- weight prep: cast matmul operands once; biases in elementwise dtype (b5 f32) ----
    fuse_skip = skip and (hidden % 128 == 0)               # lane-aligned column split
    w2 = params["w2"].astype(compute_dtype)
    w4 = params["w4"].astype(compute_dtype)
    w5 = params["w5"].astype(compute_dtype)
    if skip:
        w3_h = params["w3"][:hidden].astype(compute_dtype)
        w3_x = params["w3"][hidden:].astype(compute_dtype)
    else:
        w3_h = params["w3"].astype(compute_dtype)
        w3_x = None
    if fuse_skip:
        w1x = jnp.concatenate([params["w1"], params["w3"][hidden:]],
                              axis=1).astype(compute_dtype)   # (d_in, 2H)
        w1 = None
    else:
        w1 = params["w1"].astype(compute_dtype)
        w1x = None
    b1, b2, b3, b4 = (params[k].astype(ew_dtype) for k in ("b1", "b2", "b3", "b4"))
    b5 = params["b5"].astype(jnp.float32)

    kernel = functools.partial(
        _mlp_kernel, skip=skip, fuse_skip=fuse_skip, emit_feature=return_feature,
        slope=slope, compute_dtype=compute_dtype, ew_dtype=ew_dtype, hidden=hidden)

    def bcast_spec(arr):
        return pl.BlockSpec(arr.shape, lambda i: (0, 0))

    inputs = [x_flat]
    in_specs = [pl.BlockSpec((tm_eff, n_dim), lambda i: (i, 0))]
    if fuse_skip:
        weights = [w1x, b1, w2, b2, w3_h, b3, w4, b4, w5, b5]
    elif skip:
        weights = [w1, b1, w2, b2, w3_h, b3, w3_x, w4, b4, w5, b5]
    else:
        weights = [w1, b1, w2, b2, w3_h, b3, w4, b4, w5, b5]
    inputs += weights
    in_specs += [bcast_spec(w) for w in weights]

    out_shapes = [jax.ShapeDtypeStruct((M_pad, d_out), out_dtype)]
    out_specs = [pl.BlockSpec((tm_eff, d_out), lambda i: (i, 0))]
    if return_feature:
        out_shapes.append(jax.ShapeDtypeStruct((M_pad, hidden), feat_dtype))
        out_specs.append(pl.BlockSpec((tm_eff, hidden), lambda i: (i, 0)))

    # ---- cost estimate (helps XLA schedule the wrapper-side casts/pad around the kernel) ----
    k3_in = hidden + (n_dim if skip else 0)
    flops = 2 * M_pad * (n_dim * hidden + hidden * hidden + k3_in * hidden
                         + hidden * hidden + hidden * d_out)
    w_bytes = sum(int(w.nbytes) for w in weights)
    bytes_accessed = (int(x_flat.nbytes) + M_pad * d_out * jnp.dtype(out_dtype).itemsize
                      + (M_pad * hidden * jnp.dtype(feat_dtype).itemsize
                         if return_feature else 0) + w_bytes)
    cost = pl.CostEstimate(flops=int(flops), transcendentals=0,
                           bytes_accessed=int(bytes_accessed))

    # ---- explicit VMEM budget: double-buffered I/O tiles + weights + f32 intermediates,
    #      clamped to [32, 48] MiB (safe on v4..v6e's 128 MiB and v7x's 64 MiB per TC). ----
    if vmem_limit_bytes is None:
        csz = jnp.dtype(compute_dtype).itemsize
        io_bytes = 2 * (tm_eff * n_dim * csz
                        + tm_eff * d_out * jnp.dtype(out_dtype).itemsize
                        + (tm_eff * hidden * jnp.dtype(feat_dtype).itemsize
                           if return_feature else 0))
        interm_bytes = 6 * tm_eff * max(hidden, d_out) * 4
        est = io_bytes + 2 * w_bytes + interm_bytes + (4 << 20)
        vmem_limit_bytes = int(max(32 << 20, min(48 << 20, est)))

    results = pl.pallas_call(
        kernel,
        out_shape=tuple(out_shapes),
        grid_spec=pltpu.PrefetchScalarGridSpec(
            num_scalar_prefetch=0,
            grid=(M_pad // tm_eff,),
            in_specs=in_specs,
            out_specs=out_specs,
        ),
        compiler_params=pltpu.CompilerParams(
            dimension_semantics=("parallel",),
            vmem_limit_bytes=vmem_limit_bytes),
        cost_estimate=cost,
    )(*inputs)

    out_flat = results[0][:M]
    if matrix:
        x_full = out_flat.reshape(n_batch, n_point, -1, 3)
    else:
        x_full = out_flat.reshape(n_batch, n_point, -1)
    if return_feature:
        feature = results[1][:M].reshape(n_batch, n_point, -1)
        return x_full, feature
    return x_full


def _reference_forward(x, params, *, matrix=False, skip=False, slope=0.01):
    n_batch, n_point, n_dim = x.shape
    h0 = x.reshape(n_batch * n_point, n_dim)

    def lrelu(v):
        return jnp.where(v > 0, v, slope * v)

    h = lrelu(h0 @ params["w1"] + params["b1"])
    h = lrelu(h @ params["w2"] + params["b2"])
    if skip:
        h = jnp.concatenate([h, h0], axis=-1)
    h = lrelu(h @ params["w3"] + params["b3"])
    h = h @ params["w4"] + params["b4"]
    feat = h
    h = lrelu(h)
    out = h @ params["w5"] + params["b5"]
    if matrix:
        out = out.reshape(n_batch, n_point, -1, 3)
    else:
        out = out.reshape(n_batch, n_point, -1)
    return out, feat.reshape(n_batch, n_point, -1)


if __name__ == "__main__":
    key = jax.random.PRNGKey(0)
    k_x, k_p1, k_p2, k_p3 = jax.random.split(key, 4)

    # small shapes consistent with the module's [B, N, D] input
    B, N, D_IN = 2, 64, 8
    HIDDEN, D_OUT = 32, 12   # D_OUT divisible by 3 so the matrix=True reshape is valid

    x = jax.random.normal(k_x, (B, N, D_IN), dtype=jnp.float32)

    # --- variant 1: f32 MXU + f32 elementwise, skip=False, return_feature=True (tight) ---
    params = init_params(k_p1, D_IN, D_OUT, hidden_size=HIDDEN, skip=False)
    out, feat = lbs_pbs_forward(x, params, skip=False, return_feature=True,
                                use_bf16_matmul=False)
    out, feat = jax.block_until_ready((out, feat))
    ref_out, ref_feat = _reference_forward(x, params, skip=False)
    assert out.shape == (B, N, D_OUT), out.shape
    assert feat.shape == (B, N, HIDDEN), feat.shape
    assert jnp.allclose(out, ref_out, atol=1e-4, rtol=1e-4)
    assert jnp.allclose(feat, ref_feat, atol=1e-4, rtol=1e-4)

    # --- variant 2: bf16 MXU (+bf16 elementwise where supported), skip=True (split-w3) ---
    params_s = init_params(k_p2, D_IN, D_OUT, hidden_size=HIDDEN, skip=True)
    out_s, feat_s = lbs_pbs_forward(x, params_s, skip=True, return_feature=True,
                                    use_bf16_matmul=True)
    out_s, feat_s = jax.block_until_ready((out_s, feat_s))
    ref_out_s, ref_feat_s = _reference_forward(x, params_s, skip=True)
    assert out_s.shape == (B, N, D_OUT)
    assert jnp.allclose(out_s, ref_out_s, atol=1e-1, rtol=1e-1)
    assert jnp.allclose(feat_s, ref_feat_s, atol=1e-1, rtol=1e-1)

    # --- variant 3: single output (feat writeback dropped), matrix reshape ---
    out_m = lbs_pbs_forward(x, params, matrix=True, skip=False,
                            return_feature=False, use_bf16_matmul=True)
    out_m = jax.block_until_ready(out_m)
    assert out_m.shape == (B, N, D_OUT // 3, 3), out_m.shape
    assert jnp.allclose(out_m.reshape(B, N, D_OUT), ref_out, atol=1e-1, rtol=1e-1)

    # --- variant 4: hidden=128 exercises the fused skip path (lane-aligned column split) ---
    H128 = 128
    params_f = init_params(k_p3, D_IN, D_OUT, hidden_size=H128, skip=True)
    out_f, feat_f = lbs_pbs_forward(x, params_f, skip=True, return_feature=True,
                                    use_bf16_matmul=True,
                                    feature_dtype=jnp.bfloat16)   # opt-in bf16 feat store
    out_f, feat_f = jax.block_until_ready((out_f, feat_f))
    ref_out_f, ref_feat_f = _reference_forward(x, params_f, skip=True)
    assert out_f.shape == (B, N, D_OUT) and feat_f.shape == (B, N, H128)
    assert jnp.allclose(out_f, ref_out_f, atol=1e-1, rtol=1e-1)
    assert jnp.allclose(feat_f.astype(jnp.float32), ref_feat_f, atol=2e-1, rtol=2e-1)

    # --- empty-input path ---
    x_empty = jnp.zeros((2, 0, D_IN), jnp.float32)
    out_e, feat_e = lbs_pbs_forward(x_empty, params, return_feature=True)
    assert out_e.shape == (2, 0, D_OUT) and feat_e.shape == (2, 0, HIDDEN)

    print("KERNEL_OK")
</pallas_src>

<mosaic_0001>
module attributes {stable_mosaic.version = 11 : i64} {
  func.func @_mlp_kernel(%arg0: i32, %arg1: memref<64x8xf32, #tpu.memory_space<vmem>>, %arg2: memref<8x32xf32, #tpu.memory_space<vmem>>, %arg3: memref<1x32xf32, #tpu.memory_space<vmem>>, %arg4: memref<32x32xf32, #tpu.memory_space<vmem>>, %arg5: memref<1x32xf32, #tpu.memory_space<vmem>>, %arg6: memref<32x32xf32, #tpu.memory_space<vmem>>, %arg7: memref<1x32xf32, #tpu.memory_space<vmem>>, %arg8: memref<32x32xf32, #tpu.memory_space<vmem>>, %arg9: memref<1x32xf32, #tpu.memory_space<vmem>>, %arg10: memref<32x12xf32, #tpu.memory_space<vmem>>, %arg11: memref<1x12xf32, #tpu.memory_space<vmem>>, %arg12: memref<64x12xf32, #tpu.memory_space<vmem>>, %arg13: memref<64x32xf32, #tpu.memory_space<vmem>>) attributes {dimension_semantics = [#tpu.dimension_semantics<parallel>], iteration_bounds = array<i64: 2>, scalar_prefetch = 0 : i64, scratch_operands = 0 : i64, tpu.core_type = #tpu.core_type<tc>, window_params = [{transform_indices = @transform_0, window_bounds = array<i64: 64, 8>}, {pipeline_mode = #tpu.pipeline_mode<synchronous>, transform_indices = @transform_1, window_bounds = array<i64: 8, 32>}, {pipeline_mode = #tpu.pipeline_mode<synchronous>, transform_indices = @transform_2, window_bounds = array<i64: 1, 32>}, {pipeline_mode = #tpu.pipeline_mode<synchronous>, transform_indices = @transform_3, window_bounds = array<i64: 32, 32>}, {pipeline_mode = #tpu.pipeline_mode<synchronous>, transform_indices = @transform_4, window_bounds = array<i64: 1, 32>}, {pipeline_mode = #tpu.pipeline_mode<synchronous>, transform_indices = @transform_5, window_bounds = array<i64: 32, 32>}, {pipeline_mode = #tpu.pipeline_mode<synchronous>, transform_indices = @transform_6, window_bounds = array<i64: 1, 32>}, {pipeline_mode = #tpu.pipeline_mode<synchronous>, transform_indices = @transform_7, window_bounds = array<i64: 32, 32>}, {pipeline_mode = #tpu.pipeline_mode<synchronous>, transform_indices = @transform_8, window_bounds = array<i64: 1, 32>}, {pipeline_mode = #tpu.pipeline_mode<synchronous>, transform_indices = @transform_9, window_bounds = array<i64: 32, 12>}, {pipeline_mode = #tpu.pipeline_mode<synchronous>, transform_indices = @transform_10, window_bounds = array<i64: 1, 12>}, {transform_indices = @transform_11, window_bounds = array<i64: 64, 12>}, {transform_indices = @transform_12, window_bounds = array<i64: 64, 32>}]} {
    %c0 = arith.constant 0 : index
    %c0_0 = arith.constant 0 : index
    %0 = vector.load %arg1[%c0, %c0_0] : memref<64x8xf32, #tpu.memory_space<vmem>>, vector<64x8xf32>
    %c0_1 = arith.constant 0 : index
    %c0_2 = arith.constant 0 : index
    %1 = vector.load %arg2[%c0_1, %c0_2] : memref<8x32xf32, #tpu.memory_space<vmem>>, vector<8x32xf32>
    %cst = arith.constant dense<0.000000e+00> : vector<64x32xf32>
    %2 = tpu.matmul %0, %1, %cst {dimension_numbers = #tpu.dot_dimension_numbers<[1], [0], [0], [1], [0, 0, 1, 1], [], []>} : vector<64x8xf32>, vector<8x32xf32>, vector<64x32xf32> -> vector<64x32xf32>
    %c0_3 = arith.constant 0 : index
    %c0_4 = arith.constant 0 : index
    %3 = vector.load %arg3[%c0_3, %c0_4] : memref<1x32xf32, #tpu.memory_space<vmem>>, vector<1x32xf32>
    %4 = vector.broadcast %3 : vector<1x32xf32> to vector<64x32xf32>
    %5 = arith.addf %2, %4 : vector<64x32xf32>
    %cst_5 = arith.constant 0.00999999977 : f32
    %6 = vector.broadcast %cst_5 : f32 to vector<64x32xf32>
    %7 = arith.mulf %6, %5 : vector<64x32xf32>
    %8 = arith.maximumf %5, %7 : vector<64x32xf32>
    %c0_6 = arith.constant 0 : index
    %c0_7 = arith.constant 0 : index
    %9 = vector.load %arg4[%c0_6, %c0_7] : memref<32x32xf32, #tpu.memory_space<vmem>>, vector<32x32xf32>
    %cst_8 = arith.constant dense<0.000000e+00> : vector<64x32xf32>
    %10 = tpu.matmul %8, %9, %cst_8 {dimension_numbers = #tpu.dot_dimension_numbers<[1], [0], [0], [1], [0, 0, 1, 1], [], []>} : vector<64x32xf32>, vector<32x32xf32>, vector<64x32xf32> -> vector<64x32xf32>
    %c0_9 = arith.constant 0 : index
    %c0_10 = arith.constant 0 : index
    %11 = vector.load %arg5[%c0_9, %c0_10] : memref<1x32xf32, #tpu.memory_space<vmem>>, vector<1x32xf32>
    %12 = vector.broadcast %11 : vector<1x32xf32> to vector<64x32xf32>
    %13 = arith.addf %10, %12 : vector<64x32xf32>
    %cst_11 = arith.constant 0.00999999977 : f32
    %14 = vector.broadcast %cst_11 : f32 to vector<64x32xf32>
    %15 = arith.mulf %14, %13 : vector<64x32xf32>
    %16 = arith.maximumf %13, %15 : vector<64x32xf32>
    %c0_12 = arith.constant 0 : index
    %c0_13 = arith.constant 0 : index
    %17 = vector.load %arg6[%c0_12, %c0_13] : memref<32x32xf32, #tpu.memory_space<vmem>>, vector<32x32xf32>
    %cst_14 = arith.constant dense<0.000000e+00> : vector<64x32xf32>
    %18 = tpu.matmul %16, %17, %cst_14 {dimension_numbers = #tpu.dot_dimension_numbers<[1], [0], [0], [1], [0, 0, 1, 1], [], []>} : vector<64x32xf32>, vector<32x32xf32>, vector<64x32xf32> -> vector<64x32xf32>
    %c0_15 = arith.constant 0 : index
    %c0_16 = arith.constant 0 : index
    %19 = vector.load %arg7[%c0_15, %c0_16] : memref<1x32xf32, #tpu.memory_space<vmem>>, vector<1x32xf32>
    %20 = vector.broadcast %19 : vector<1x32xf32> to vector<64x32xf32>
    %21 = arith.addf %18, %20 : vector<64x32xf32>
    %cst_17 = arith.constant 0.00999999977 : f32
    %22 = vector.broadcast %cst_17 : f32 to vector<64x32xf32>
    %23 = arith.mulf %22, %21 : vector<64x32xf32>
    %24 = arith.maximumf %21, %23 : vector<64x32xf32>
    %c0_18 = arith.constant 0 : index
    %c0_19 = arith.constant 0 : index
    %25 = vector.load %arg8[%c0_18, %c0_19] : memref<32x32xf32, #tpu.memory_space<vmem>>, vector<32x32xf32>
    %cst_20 = arith.constant dense<0.000000e+00> : vector<64x32xf32>
    %26 = tpu.matmul %24, %25, %cst_20 {dimension_numbers = #tpu.dot_dimension_numbers<[1], [0], [0], [1], [0, 0, 1, 1], [], []>} : vector<64x32xf32>, vector<32x32xf32>, vector<64x32xf32> -> vector<64x32xf32>
    %c0_21 = arith.constant 0 : index
    %c0_22 = arith.constant 0 : index
    %27 = vector.load %arg9[%c0_21, %c0_22] : memref<1x32xf32, #tpu.memory_space<vmem>>, vector<1x32xf32>
    %28 = vector.broadcast %27 : vector<1x32xf32> to vector<64x32xf32>
    %29 = arith.addf %26, %28 : vector<64x32xf32>
    %c0_23 = arith.constant 0 : index
    %c0_24 = arith.constant 0 : index
    %30 = vector.load %arg13[%c0_23, %c0_24] : memref<64x32xf32, #tpu.memory_space<vmem>>, vector<64x32xf32>
    tpu.vector_store %arg13[%c0_23, %c0_24], %29 {strides = array<i32>} : memref<64x32xf32, #tpu.memory_space<vmem>>, vector<64x32xf32>,
    %cst_25 = arith.constant 0.00999999977 : f32
    %31 = vector.broadcast %cst_25 : f32 to vector<64x32xf32>
    %32 = arith.mulf %31, %29 : vector<64x32xf32>
    %33 = arith.maximumf %29, %32 : vector<64x32xf32>
    %c0_26 = arith.constant 0 : index
    %c0_27 = arith.constant 0 : index
    %34 = vector.load %arg10[%c0_26, %c0_27] : memref<32x12xf32, #tpu.memory_space<vmem>>, vector<32x12xf32>
    %cst_28 = arith.constant dense<0.000000e+00> : vector<64x12xf32>
    %35 = tpu.matmul %33, %34, %cst_28 {dimension_numbers = #tpu.dot_dimension_numbers<[1], [0], [0], [1], [0, 0, 1, 1], [], []>} : vector<64x32xf32>, vector<32x12xf32>, vector<64x12xf32> -> vector<64x12xf32>
    %c0_29 = arith.constant 0 : index
    %c0_30 = arith.constant 0 : index
    %36 = vector.load %arg11[%c0_29, %c0_30] : memref<1x12xf32, #tpu.memory_space<vmem>>, vector<1x12xf32>
    %37 = vector.broadcast %36 : vector<1x12xf32> to vector<64x12xf32>
    %38 = arith.addf %35, %37 : vector<64x12xf32>
    %c0_31 = arith.constant 0 : index
    %c0_32 = arith.constant 0 : index
    %39 = vector.load %arg12[%c0_31, %c0_32] : memref<64x12xf32, #tpu.memory_space<vmem>>, vector<64x12xf32>
    tpu.vector_store %arg12[%c0_31, %c0_32], %38 {strides = array<i32>} : memref<64x12xf32, #tpu.memory_space<vmem>>, vector<64x12xf32>,
    return
  }
  func.func @transform_0(%arg0: i32) -> (i32, i32) {
    %c0_i32 = arith.constant 0 : i32
    %c0_i32_0 = arith.constant 0 : i32
    return %arg0, %c0_i32 : i32, i32
  }
  func.func @transform_1(%arg0: i32) -> (i32, i32) {
    %c0_i32 = arith.constant 0 : i32
    %c0_i32_0 = arith.constant 0 : i32
    %c0_i32_1 = arith.constant 0 : i32
    return %c0_i32, %c0_i32_0 : i32, i32
  }
  func.func @transform_2(%arg0: i32) -> (i32, i32) {
    %c0_i32 = arith.constant 0 : i32
    %c0_i32_0 = arith.constant 0 : i32
    %c0_i32_1 = arith.constant 0 : i32
    return %c0_i32, %c0_i32_0 : i32, i32
  }
  func.func @transform_3(%arg0: i32) -> (i32, i32) {
    %c0_i32 = arith.constant 0 : i32
    %c0_i32_0 = arith.constant 0 : i32
    %c0_i32_1 = arith.constant 0 : i32
    return %c0_i32, %c0_i32_0 : i32, i32
  }
  func.func @transform_4(%arg0: i32) -> (i32, i32) {
    %c0_i32 = arith.constant 0 : i32
    %c0_i32_0 = arith.constant 0 : i32
    %c0_i32_1 = arith.constant 0 : i32
    return %c0_i32, %c0_i32_0 : i32, i32
  }
  func.func @transform_5(%arg0: i32) -> (i32, i32) {
    %c0_i32 = arith.constant 0 : i32
    %c0_i32_0 = arith.constant 0 : i32
    %c0_i32_1 = arith.constant 0 : i32
    return %c0_i32, %c0_i32_0 : i32, i32
  }
  func.func @transform_6(%arg0: i32) -> (i32, i32) {
    %c0_i32 = arith.constant 0 : i32
    %c0_i32_0 = arith.constant 0 : i32
    %c0_i32_1 = arith.constant 0 : i32
    return %c0_i32, %c0_i32_0 : i32, i32
  }
  func.func @transform_7(%arg0: i32) -> (i32, i32) {
    %c0_i32 = arith.constant 0 : i32
    %c0_i32_0 = arith.constant 0 : i32
    %c0_i32_1 = arith.constant 0 : i32
    return %c0_i32, %c0_i32_0 : i32, i32
  }
  func.func @transform_8(%arg0: i32) -> (i32, i32) {
    %c0_i32 = arith.constant 0 : i32
    %c0_i32_0 = arith.constant 0 : i32
    %c0_i32_1 = arith.constant 0 : i32
    return %c0_i32, %c0_i32_0 : i32, i32
  }
  func.func @transform_9(%arg0: i32) -> (i32, i32) {
    %c0_i32 = arith.constant 0 : i32
    %c0_i32_0 = arith.constant 0 : i32
    %c0_i32_1 = arith.constant 0 : i32
    return %c0_i32, %c0_i32_0 : i32, i32
  }
  func.func @transform_10(%arg0: i32) -> (i32, i32) {
    %c0_i32 = arith.constant 0 : i32
    %c0_i32_0 = arith.constant 0 : i32
    %c0_i32_1 = arith.constant 0 : i32
    return %c0_i32, %c0_i32_0 : i32, i32
  }
  func.func @transform_11(%arg0: i32) -> (i32, i32) {
    %c0_i32 = arith.constant 0 : i32
    %c0_i32_0 = arith.constant 0 : i32
    return %arg0, %c0_i32 : i32, i32
  }
  func.func @transform_12(%arg0: i32) -> (i32, i32) {
    %c0_i32 = arith.constant 0 : i32
    %c0_i32_0 = arith.constant 0 : i32
    return %arg0, %c0_i32 : i32, i32
  }
}

</mosaic_0001>

<bundles_post_ra>
// kernel: tpu_custom_call.1
= control target key start
LH: loop header
LB: loop body
LE: loop exit
PB: predicated region body
PF: predicated region fallthrough
CT: control target
= control target key end

     0   :  { %s1633_s21 = smov 0   ;;  %s1790_s0 = inlined_call_operand.vmem [shape: f32[128,8], index: 0, kind: input, shape index: {}]   ;;  %s1791_s1 = inlined_call_operand.vmem [shape: f32[8,32], index: 1, kind: input, shape index: {}]   ;;  %s1792_s2 = inlined_call_operand.vmem [shape: f32[1,32], index: 2, kind: input, shape index: {}]   ;;  %s1793_s3 = inlined_call_operand.vmem [shape: f32[32,32], index: 3, kind: input, shape index: {}]   ;;  %s1794_s4 = inlined_call_operand.vmem [shape: f32[1,32], index: 4, kind: input, shape index: {}]   ;;  %s1795_s5 = inlined_call_operand.vmem [shape: f32[32,32], index: 5, kind: input, shape index: {}]   ;;  %s1796_s6 = inlined_call_operand.vmem [shape: f32[1,32], index: 6, kind: input, shape index: {}]   ;;  %s1797_s7 = inlined_call_operand.vmem [shape: f32[32,32], index: 7, kind: input, shape index: {}]   ;;  %s1798_s8 = inlined_call_operand.vmem [shape: f32[1,32], index: 8, kind: input, shape index: {}]   ;;  %s1799_s9 = inlined_call_operand.vmem [shape: f32[32,12], index: 9, kind: input, shape index: {}]   ;;  %s1800_s10 = inlined_call_operand.vmem [shape: f32[1,12], index: 10, kind: input, shape index: {}]   ;;  %s1801_s11 = inlined_call_operand.vmem [shape: f32[128,12], index: 11, kind: output, shape index: {0}]   ;;  %s1802_s12 = inlined_call_operand.vmem [shape: f32[128,32], index: 12, kind: output, shape index: {1}]  }
   0x1 LB: > { %s1309_s22 = sadd.s32 4294967295, %s1566_s21   ;;  %p1313_p0 = scmp.ge.s32.totalorder %s1566_s21, 1  ;;  %s1566_s21 = sphi %s1633_s21, %s23_s21  }
   0x2   : > { %p366_p1 = scmp.lt.s32.totalorder %s1566_s21, 3 }
   0x4   : > { %p367_p2 = pnand %p1313_p0, %p366_p1 }
   0x5   : > { %v439_v0 = vld [vmem:[%s1791_s1] sm:$0xff] (!%p367_p2)  ;;  %s1314_s25 = sshll.u32 (!%p367_p2), %s1309_s22, 3  ;;  %vm447_vm0 = vcmask (!%p367_p2), 64512   ;;  %v594_v10 = vld [vmem:[%s1793_s3 + $0x8] sm:$0xff] (!%p367_p2)  ;;  %v595_v12 = vld [vmem:[%s1793_s3 + $0x10] sm:$0xff] (!%p367_p2)  ;;  %vm604_vm1 = vcmask (!%p367_p2), 261120  }
   0x6   : > { %370 = sbr.rel (%p367_p2) target bundleno = 1126 (0x466), region = 64  ;;  %1424 = vmatprep.subr.mxu0 (!%p367_p2), %v439_v0  ;;  %p414_p3 = scmp.lt.s32.totalorder (!%p367_p2), %s1314_s25, 15  ;;  %1550 = vmatprep.subr.mxu1 (!%p367_p2), %v439_v0  ;;  %v593_v9 = vld [vmem:[%s1793_s3] sm:$0xff] (!%p367_p2)  ;;  %v596_v13 = vld [vmem:[%s1793_s3 + $0x18] sm:$0xff] (!%p367_p2)  ;;  %v751_v49 = vld [vmem:[%s1795_s5 + $0x8] sm:$0xff] (!%p367_p2)  ;;  %vm1210_vm2 = vcmask (!%p367_p2), 97280  }
   0x7   : > { %1425 = vmatpush3.msra.mxu0 (!%p367_p2), %v439_v0  ;;  %1551 = vmatpush3.msra.mxu1 (!%p367_p2), %v439_v0  ;;  %v1518_v11 = vpack.c.bf16 (!%p367_p2), %v594_v10, %v593_v9  ;;  %v1522_v14 = vpack.c.bf16 (!%p367_p2), %v596_v13, %v595_v12  ;;  %v1320_v15 = vld [vmem:[%s1792_s2] ss:$0 sm:$0xff] (!%p367_p2)  ;;  %v752_v51 = vld [vmem:[%s1795_s5 + $0x10] sm:$0xff] (!%p367_p2)  ;;  %v753_v52 = vld [vmem:[%s1795_s5 + $0x18] sm:$0xff] (!%p367_p2) }
   0x8   : > { %v750_v48 = vld [vmem:[%s1795_s5] sm:$0xff] (!%p367_p2)  ;;  %v1530_v53 = vpack.c.bf16 (!%p367_p2), %v753_v52, %v752_v51  ;;  %v907_v55 = vld [vmem:[%s1797_s7 + $0x8] sm:$0xff] (!%p367_p2) }
   0x9   : > { %1519 = vmatprep.subr.bf16.mxu1 (!%p367_p2), %v1518_v11  ;;  %v1526_v50 = vpack.c.bf16 (!%p367_p2), %v751_v49, %v750_v48  ;;  %v906_v54 = vld [vmem:[%s1797_s7] sm:$0xff] (!%p367_p2) }
   0xa   : > { %v1534_v56 = vpack.c.bf16 (!%p367_p2), %v907_v55, %v906_v54  ;;  %v1329_v57 = vld [vmem:[%s1794_s4] ss:$0 sm:$0xff] (!%p367_p2) }
   0xb   : > { %1527 = vmatprep.subr.bf16.mxu0 (!%p367_p2), %v1526_v50 }
   0xd   : > { %s1804_s25 = smov (!%p414_p3, %s1314_s25), 15 }
   0xe   : > { %s1644_s26 = sshll.u32 %s1804_s25, 3 }
   0xf   : > { %s417_s29 = scalar_lea.vmem %s1790_s0, %s1644_s26  ;;  %s1746_s23 = scalar_lea.vmem %s1802_s12, %s1644_s26 }
  0x10   : > { %v431_v1 = vld [vmem:[%s417_s29] sm:$0xff]  ;;  %v432_v2 = vld [vmem:[%s417_s29 + $0x8] sm:$0xff]  ;;  %v433_v3 = vld [vmem:[%s417_s29 + $0x10] sm:$0xff] }
  0x11   : > { %1426 = vmatprep.mubr.msk.f32.mxu0 %vm447_vm0, %v431_v1  ;;  %v435_v4 = vld [vmem:[%s417_s29 + $0x20] sm:$0xff]  ;;  %v436_v5 = vld [vmem:[%s417_s29 + $0x28] sm:$0xff]  ;;  %v437_v6 = vld [vmem:[%s417_s29 + $0x30] sm:$0xff] }
  0x12   : > { %1427 = vmatmul.mubr.msk.f32.vlgmr.msra.gmra.mrb[0].mxu0 %vm447_vm0, %v432_v2  ;;  %1432 = vmatprep.mubr.msk.f32.mxu1 %vm447_vm0, %v435_v4  ;;  %v434_v7 = vld [vmem:[%s417_s29 + $0x18] sm:$0xff] }
  0x13   : > { %1429 = vmatprep.mubr.msk.f32.mxu0 %vm447_vm0, %v433_v3  ;;  %1433 = vmatmul.mubr.msk.f32.vlgmr.msra.gmra.mrb[0].mxu1 %vm447_vm0, %v436_v5  ;;  %v438_v8 = vld [vmem:[%s417_s29 + $0x38] sm:$0xff]  ;;  %s423_s29 = scalar_lea.vmem %s1801_s11, %s1644_s26 }
  0x14   : > { %1435 = vmatprep.mubr.msk.f32.mxu1 %vm447_vm0, %v437_v6  ;;  %1521 = vmatpush3.bf16.msra.mxu1 %v1518_v11 }
  0x15   : > { %1523 = vmatprep.subr.bf16.mxu1 %v1522_v14  ;;  %1529 = vmatpush3.bf16.msra.mxu0 %v1526_v50 }
  0x16   : > { %1430 = vmatmul.mubr.msk.f32.gmra.mrb[2].mxu0 %vm447_vm0, %v434_v7  ;;  %1531 = vmatprep.subr.bf16.mxu0 %v1530_v53 }
  0x17   : > { %1436 = vmatmul.mubr.msk.f32.gmra.mrb[2].mxu1 %vm447_vm0, %v438_v8 }
  0x18   : > { %1525 = vmatpush3.bf16.msra.mxu1 %v1522_v14 }
  0x19   : > { %1533 = vmatpush3.bf16.msra.mxu0 %v1530_v53  ;;  %1535 = vmatprep.subr.bf16.mxu1 %v1534_v56 }
  0xe5   : > { %v1428_v16 = vpop.f32.mrb[0].mxu0 }
  0xe6   : > { %v544_v17 = vadd.f32 %v1428_v16, %v1320_v15  ;;  %v538_v18 = vpop.f32.mrb[1].mxu0  ;;  %v1434_v19 = vpop.f32.mrb[0].mxu1 }
  0xe7   : > { %v539_v20 = vadd.f32 %v1320_v15, %v538_v18  ;;  %v558_v21 = vpop.f32.mrb[1].mxu1  ;;  %v564_v35 = vadd.f32 %v1434_v19, %v1320_v15 }
  0xe8   : > { %v578_v22 = vmul.f32 0.01, %v544_v17  ;;  %v559_v23 = vadd.f32 %v1320_v15, %v558_v21 }
  0xe9   : > { %v577_v24 = vmul.f32 0.01, %v539_v20  ;;  %v1431_v25 = vpop.f32.mrb[2].mxu0  ;;  %v582_v42 = vmul.f32 0.01, %v564_v35 }
  0xea   : > { %v554_v26 = vadd.f32 %v1431_v25, %v1320_v15  ;;  %v548_v27 = vpop.f32.mrb[3].mxu0  ;;  %v1437_v28 = vpop.f32.mrb[2].mxu1  ;;  %v581_v31 = vmul.f32 0.01, %v559_v23  ;;  %v586_v33 = vmax.f32 %v544_v17, %v578_v22 }
  0xeb   : > { %v585_v29 = vmax.f32 %v539_v20, %v577_v24  ;;  %v549_v30 = vadd.f32 %v1320_v15, %v548_v27  ;;  %v568_v32 = vpop.f32.mrb[3].mxu1  ;;  %v574_v43 = vadd.f32 %v1437_v28, %v1320_v15  ;;  %v590_v45 = vmax.f32 %v564_v35, %v582_v42  ;;  %v909_v27 = vld [vmem:[%s1797_s7 + $0x18] sm:$0xff] }
  0xec   : > { %v580_v34 = vmul.f32 0.01, %v554_v26  ;;  %v569_v36 = vadd.f32 %v1320_v15, %v568_v32  ;;  %v589_v39 = vmax.f32 %v559_v23, %v581_v31  ;;  %v1338_v32 = vld [vmem:[%s1796_s6] ss:$0 sm:$0xff] }
  0xed   : > { %v579_v37 = vmul.f32 0.01, %v549_v30  ;;  %1446 = vmatprep.mubr.msk.f32.mxu1 %vm604_vm1, %v585_v29  ;;  %v584_v46 = vmul.f32 0.01, %v574_v43  ;;  %v1070_v29 = vld [vmem:[%s1799_s9] sm:$0xff] }
  0xee   : > { %1447 = vmatmul.mubr.msk.f32.vlgmr.msra.gmra.mrb[4].mxu1 %vm604_vm1, %v586_v33  ;;  %v583_v40 = vmul.f32 0.01, %v569_v36  ;;  %v588_v41 = vmax.f32 %v554_v26, %v580_v34  ;;  %v908_v26 = vld [vmem:[%s1797_s7 + $0x10] sm:$0xff] }
  0xef   : > { %v587_v38 = vmax.f32 %v549_v30, %v579_v37  ;;  %v592_v47 = vmax.f32 %v574_v43, %v584_v46  ;;  %1537 = vmatpush3.bf16.msra.mxu1 %v1534_v56  ;;  %v1538_v28 = vpack.c.bf16 %v909_v27, %v908_v26  ;;  %v1071_v30 = vld [vmem:[%s1799_s9 + $0x8] sm:$0xff] }
  0xf0   : > { %v591_v44 = vmax.f32 %v569_v36, %v583_v40  ;;  %v1542_v31 = vpack.c.bf16 %v1071_v30, %v1070_v29 }
  0xf1   : > { %1449 = vmatprep.mubr.msk.f32.mxu1 %vm604_vm1, %v587_v38  ;;  %1539 = vmatprep.subr.bf16.mxu1 %v1538_v28 }
  0xf2   : > { %1450 = vmatmul.mubr.msk.f32.gmra.mrb[6].mxu1 %vm604_vm1, %v588_v41  ;;  %1543 = vmatprep.subr.bf16.mxu0 %v1542_v31 }
  0xf3   : > { %1452 = vmatprep.mubr.msk.f32.mxu1 %vm604_vm1, %v589_v39  ;;  %1541 = vmatpush3.bf16.msra.mxu1 %v1538_v28 }
  0xf6   : > { %1453 = vmatmul.mubr.msk.f32.gmra.mrb[8].mxu1 %vm604_vm1, %v590_v45 }
  0xf7   : > { %1455 = vmatprep.mubr.msk.f32.mxu1 %vm604_vm1, %v591_v44 }
  0xfa   : > { %1456 = vmatmul.mubr.msk.f32.gmra.mrb[10].mxu1 %vm604_vm1, %v592_v47 }
 0x1c1   : > { %v1448_v58 = vpop.f32.mrb[4].mxu1 }
 0x1c2   : > { %v701_v59 = vadd.f32 %v1448_v58, %v1329_v57  ;;  %v695_v60 = vpop.f32.mrb[5].mxu1 }
 0x1c3   : > { %v696_v61 = vadd.f32 %v1329_v57, %v695_v60 }
 0x1c4   : > { %v735_v62 = vmul.f32 0.01, %v701_v59 }
 0x1c5   : > { %v734_v63 = vmul.f32 0.01, %v696_v61  ;;  %v1451_v0 = vpop.f32.mrb[6].mxu1 }
 0x1c6   : > { %v711_v1 = vadd.f32 %v1451_v0, %v1329_v57  ;;  %v705_v2 = vpop.f32.mrb[7].mxu1  ;;  %v743_v5 = vmax.f32 %v701_v59, %v735_v62 }
 0x1c7   : > { %v742_v3 = vmax.f32 %v696_v61, %v734_v63  ;;  %v706_v4 = vadd.f32 %v1329_v57, %v705_v2  ;;  %v1073_v2 = vld [vmem:[%s1799_s9 + $0x18] sm:$0xff] }
 0x1c8   : > { %v737_v6 = vmul.f32 0.01, %v711_v1 }
 0x1c9   : > { %v736_v7 = vmul.f32 0.01, %v706_v4  ;;  %v1454_v8 = vpop.f32.mrb[8].mxu1  ;;  %1466 = vmatprep.mubr.msk.f32.mxu0 %vm604_vm1, %v742_v3 }
 0x1ca   : > { %v721_v9 = vadd.f32 %v1454_v8, %v1329_v57  ;;  %v715_v10 = vpop.f32.mrb[9].mxu1  ;;  %1467 = vmatmul.mubr.msk.f32.vlgmr.msra.gmra.mrb[4].mxu0 %vm604_vm1, %v743_v5  ;;  %v745_v13 = vmax.f32 %v711_v1, %v737_v6  ;;  %v1072_v1 = vld [vmem:[%s1799_s9 + $0x10] sm:$0xff] }
 0x1cb   : > { %v744_v11 = vmax.f32 %v706_v4, %v736_v7  ;;  %v716_v12 = vadd.f32 %v1329_v57, %v715_v10  ;;  %1545 = vmatpush3.bf16.msra.mxu0 %v1542_v31  ;;  %v1546_v3 = vpack.c.bf16 %v1073_v2, %v1072_v1  ;;  %v1347_v4 = vld [vmem:[%s1798_s8] ss:$0 sm:$0xff] }
 0x1cc   : > { %v739_v14 = vmul.f32 0.01, %v721_v9 }
 0x1cd   : > { %v738_v15 = vmul.f32 0.01, %v716_v12  ;;  %v1457_v16 = vpop.f32.mrb[10].mxu1  ;;  %1469 = vmatprep.mubr.msk.f32.mxu0 %vm604_vm1, %v744_v11  ;;  %1547 = vmatprep.subr.bf16.mxu0 %v1546_v3 }
 0x1ce   : > { %v731_v17 = vadd.f32 %v1457_v16, %v1329_v57  ;;  %v725_v18 = vpop.f32.mrb[11].mxu1  ;;  %1470 = vmatmul.mubr.msk.f32.gmra.mrb[6].mxu0 %vm604_vm1, %v745_v13  ;;  %v747_v21 = vmax.f32 %v721_v9, %v739_v14 }
 0x1cf   : > { %v746_v19 = vmax.f32 %v716_v12, %v738_v15  ;;  %v726_v20 = vadd.f32 %v1329_v57, %v725_v18  ;;  %1549 = vmatpush3.bf16.msra.mxu0 %v1546_v3 }
 0x1d0   : > { %v741_v22 = vmul.f32 0.01, %v731_v17 }
 0x1d1   : > { %v740_v23 = vmul.f32 0.01, %v726_v20  ;;  %1472 = vmatprep.mubr.msk.f32.mxu0 %vm604_vm1, %v746_v19 }
 0x1d2   : > { %1473 = vmatmul.mubr.msk.f32.gmra.mrb[8].mxu0 %vm604_vm1, %v747_v21  ;;  %v749_v25 = vmax.f32 %v731_v17, %v741_v22 }
 0x1d3   : > { %v748_v24 = vmax.f32 %v726_v20, %v740_v23 }
 0x1d5   : > { %1475 = vmatprep.mubr.msk.f32.mxu0 %vm604_vm1, %v748_v24 }
 0x1d6   : > { %1476 = vmatmul.mubr.msk.f32.gmra.mrb[10].mxu0 %vm604_vm1, %v749_v25 }
 0x29d   : > { %v1468_v33 = vpop.f32.mrb[4].mxu0 }
 0x29e   : > { %v857_v34 = vadd.f32 %v1468_v33, %v1338_v32  ;;  %v851_v35 = vpop.f32.mrb[5].mxu0 }
 0x29f   : > { %v852_v36 = vadd.f32 %v1338_v32, %v851_v35 }
 0x2a0   : > { %v891_v37 = vmul.f32 0.01, %v857_v34 }
 0x2a1   : > { %v890_v38 = vmul.f32 0.01, %v852_v36  ;;  %v1471_v39 = vpop.f32.mrb[6].mxu0 }
 0x2a2   : > { %v867_v40 = vadd.f32 %v1471_v39, %v1338_v32  ;;  %v861_v41 = vpop.f32.mrb[7].mxu0  ;;  %v899_v44 = vmax.f32 %v857_v34, %v891_v37  ;;  %v1356_v37 = vld [vmem:[%s1800_s10] ss:$0 sm:$0xff] }
 0x2a3   : > { %v898_v42 = vmax.f32 %v852_v36, %v890_v38  ;;  %v862_v43 = vadd.f32 %v1338_v32, %v861_v41 }
 0x2a4   : > { %v893_v45 = vmul.f32 0.01, %v867_v40 }
 0x2a5   : > { %v892_v46 = vmul.f32 0.01, %v862_v43  ;;  %v1474_v47 = vpop.f32.mrb[8].mxu0  ;;  %1486 = vmatprep.mubr.msk.f32.mxu1 %vm604_vm1, %v898_v42 }
 0x2a6   : > { %v877_v48 = vadd.f32 %v1474_v47, %v1338_v32  ;;  %v871_v49 = vpop.f32.mrb[9].mxu0  ;;  %1487 = vmatmul.mubr.msk.f32.vlgmr.msra.gmra.mrb[12].mxu1 %vm604_vm1, %v899_v44  ;;  %v901_v52 = vmax.f32 %v867_v40, %v893_v45 }
 0x2a7   : > { %v900_v50 = vmax.f32 %v862_v43, %v892_v46  ;;  %v872_v51 = vadd.f32 %v1338_v32, %v871_v49 }
 0x2a8   : > { %v895_v53 = vmul.f32 0.01, %v877_v48 }
 0x2a9   : > { %v894_v54 = vmul.f32 0.01, %v872_v51  ;;  %v1477_v55 = vpop.f32.mrb[10].mxu0  ;;  %1489 = vmatprep.mubr.msk.f32.mxu1 %vm604_vm1, %v900_v50 }
 0x2aa   : > { %v887_v56 = vadd.f32 %v1477_v55, %v1338_v32  ;;  %v881_v57 = vpop.f32.mrb[11].mxu0  ;;  %1490 = vmatmul.mubr.msk.f32.gmra.mrb[14].mxu1 %vm604_vm1, %v901_v52  ;;  %v903_v60 = vmax.f32 %v877_v48, %v895_v53 }
 0x2ab   : > { %v902_v58 = vmax.f32 %v872_v51, %v894_v54  ;;  %v882_v59 = vadd.f32 %v1338_v32, %v881_v57 }
 0x2ac   : > { %v897_v61 = vmul.f32 0.01, %v887_v56 }
 0x2ad   : > { %v896_v62 = vmul.f32 0.01, %v882_v59  ;;  %1492 = vmatprep.mubr.msk.f32.mxu1 %vm604_vm1, %v902_v58 }
 0x2ae   : > { %1493 = vmatmul.mubr.msk.f32.gmra.mrb[16].mxu1 %vm604_vm1, %v903_v60  ;;  %v905_v0 = vmax.f32 %v887_v56, %v897_v61 }
 0x2af   : > { %v904_v63 = vmax.f32 %v882_v59, %v896_v62 }
 0x2b1   : > { %1495 = vmatprep.mubr.msk.f32.mxu1 %vm604_vm1, %v904_v63 }
 0x2b2   : > { %1496 = vmatmul.mubr.msk.f32.gmra.mrb[18].mxu1 %vm604_vm1, %v905_v0 }
 0x379   : > { %v1488_v5 = vpop.f32.mrb[12].mxu1 }
 0x37a   : > { %v1013_v6 = vadd.f32 %v1488_v5, %v1347_v4  ;;  %v1007_v7 = vpop.f32.mrb[13].mxu1 }
 0x37b   : > { %v1008_v8 = vadd.f32 %v1347_v4, %v1007_v7 }
 0x37c   : > { %1047 = vst.msk [vmem:[%s1746_s23 + $0x8] sm:$0xff] %vm604_vm1, %v1013_v6  ;;  %v1055_v9 = vmul.f32 0.01, %v1013_v6 }
 0x37d   : > { %1046 = vst.msk [vmem:[%s1746_s23] sm:$0xff] %vm604_vm1, %v1008_v8  ;;  %v1054_v10 = vmul.f32 0.01, %v1008_v8  ;;  %v1491_v11 = vpop.f32.mrb[14].mxu1 }
 0x37e   : > { %v1023_v12 = vadd.f32 %v1491_v11, %v1347_v4  ;;  %v1017_v13 = vpop.f32.mrb[15].mxu1  ;;  %v1063_v16 = vmax.f32 %v1013_v6, %v1055_v9 }
 0x37f   : > { %v1062_v14 = vmax.f32 %v1008_v8, %v1054_v10  ;;  %v1018_v15 = vadd.f32 %v1347_v4, %v1017_v13 }
 0x380   : > { %1049 = vst.msk [vmem:[%s1746_s23 + $0x18] sm:$0xff] %vm604_vm1, %v1023_v12  ;;  %v1057_v17 = vmul.f32 0.01, %v1023_v12 }
 0x381   : > { %1048 = vst.msk [vmem:[%s1746_s23 + $0x10] sm:$0xff] %vm604_vm1, %v1018_v15  ;;  %v1056_v18 = vmul.f32 0.01, %v1018_v15  ;;  %v1494_v19 = vpop.f32.mrb[16].mxu1  ;;  %1506 = vmatprep.mubr.msk.f32.mxu0 %vm604_vm1, %v1062_v14 }
 0x382   : > { %v1033_v20 = vadd.f32 %v1494_v19, %v1347_v4  ;;  %v1027_v21 = vpop.f32.mrb[17].mxu1  ;;  %1507 = vmatmul.mubr.msk.f32.vlgmr.msra.gmra.mrb[12].mxu0 %vm604_vm1, %v1063_v16  ;;  %v1065_v24 = vmax.f32 %v1023_v12, %v1057_v17 }
 0x383   : > { %v1064_v22 = vmax.f32 %v1018_v15, %v1056_v18  ;;  %v1028_v23 = vadd.f32 %v1347_v4, %v1027_v21 }
 0x384   : > { %1051 = vst.msk [vmem:[%s1746_s23 + $0x28] sm:$0xff] %vm604_vm1, %v1033_v20  ;;  %v1059_v25 = vmul.f32 0.01, %v1033_v20 }
 0x385   : > { %1050 = vst.msk [vmem:[%s1746_s23 + $0x20] sm:$0xff] %vm604_vm1, %v1028_v23  ;;  %v1058_v26 = vmul.f32 0.01, %v1028_v23  ;;  %v1497_v27 = vpop.f32.mrb[18].mxu1  ;;  %1509 = vmatprep.mubr.msk.f32.mxu0 %vm604_vm1, %v1064_v22 }
 0x386   : > { %v1043_v28 = vadd.f32 %v1497_v27, %v1347_v4  ;;  %v1037_v29 = vpop.f32.mrb[19].mxu1  ;;  %1510 = vmatmul.mubr.msk.f32.gmra.mrb[14].mxu0 %vm604_vm1, %v1065_v24  ;;  %v1067_v32 = vmax.f32 %v1033_v20, %v1059_v25 }
 0x387   : > { %v1066_v30 = vmax.f32 %v1028_v23, %v1058_v26  ;;  %v1038_v31 = vadd.f32 %v1347_v4, %v1037_v29 }
 0x388   : > { %1053 = vst.msk [vmem:[%s1746_s23 + $0x38] sm:$0xff] %vm604_vm1, %v1043_v28  ;;  %v1061_v33 = vmul.f32 0.01, %v1043_v28 }
 0x389   : > { %1052 = vst.msk [vmem:[%s1746_s23 + $0x30] sm:$0xff] %vm604_vm1, %v1038_v31  ;;  %v1060_v34 = vmul.f32 0.01, %v1038_v31  ;;  %1512 = vmatprep.mubr.msk.f32.mxu0 %vm604_vm1, %v1066_v30 }
 0x38a   : > { %1513 = vmatmul.mubr.msk.f32.gmra.mrb[16].mxu0 %vm604_vm1, %v1067_v32  ;;  %v1069_v36 = vmax.f32 %v1043_v28, %v1061_v33 }
 0x38b   : > { %v1068_v35 = vmax.f32 %v1038_v31, %v1060_v34 }
 0x38d   : > { %1515 = vmatprep.mubr.msk.f32.mxu0 %vm604_vm1, %v1068_v35 }
 0x38e   : > { %1516 = vmatmul.mubr.msk.f32.gmra.mrb[18].mxu0 %vm604_vm1, %v1069_v36 }
 0x455   : > { %v1508_v38 = vpop.f32.mrb[12].mxu0 }
 0x456   : > { %v1177_v39 = vadd.f32 %v1508_v38, %v1356_v37  ;;  %v1171_v40 = vpop.f32.mrb[13].mxu0 }
 0x457   : > { %v1172_v41 = vadd.f32 %v1356_v37, %v1171_v40 }
 0x458   : > { %1212 = vst.msk [vmem:[%s423_s29 + $0x8] sm:$0xff] %vm1210_vm2, %v1177_v39 }
 0x459   : > { %1211 = vst.msk [vmem:[%s423_s29] sm:$0xff] %vm1210_vm2, %v1172_v41  ;;  %v1511_v42 = vpop.f32.mrb[14].mxu0 }
 0x45a   : > { %v1187_v43 = vadd.f32 %v1511_v42, %v1356_v37  ;;  %v1181_v44 = vpop.f32.mrb[15].mxu0 }
 0x45b   : > { %v1182_v45 = vadd.f32 %v1356_v37, %v1181_v44 }
 0x45c   : > { %1214 = vst.msk [vmem:[%s423_s29 + $0x18] sm:$0xff] %vm1210_vm2, %v1187_v43 }
 0x45d   : > { %1213 = vst.msk [vmem:[%s423_s29 + $0x10] sm:$0xff] %vm1210_vm2, %v1182_v45  ;;  %v1514_v46 = vpop.f32.mrb[16].mxu0 }
 0x45e   : > { %v1197_v47 = vadd.f32 %v1514_v46, %v1356_v37  ;;  %v1191_v48 = vpop.f32.mrb[17].mxu0 }
 0x45f   : > { %v1192_v49 = vadd.f32 %v1356_v37, %v1191_v48 }
 0x460   : > { %1216 = vst.msk [vmem:[%s423_s29 + $0x28] sm:$0xff] %vm1210_vm2, %v1197_v47 }
 0x461   : > { %1215 = vst.msk [vmem:[%s423_s29 + $0x20] sm:$0xff] %vm1210_vm2, %v1192_v49  ;;  %v1517_v50 = vpop.f32.mrb[18].mxu0 }
 0x462   : > { %v1207_v51 = vadd.f32 %v1517_v50, %v1356_v37  ;;  %v1201_v52 = vpop.f32.mrb[19].mxu0 }
 0x463   : > { %v1202_v53 = vadd.f32 %v1356_v37, %v1201_v52 }
 0x464   : > { %1218 = vst.msk [vmem:[%s423_s29 + $0x38] sm:$0xff] %vm1210_vm2, %v1207_v51 }
 0x465   : > { %1217 = vst.msk [vmem:[%s423_s29 + $0x30] sm:$0xff] %vm1210_vm2, %v1202_v53 }
 0x466 PF: > { %s23_s21 = sadd.s32 1, %s1566_s21  }
 0x467   : > { %p20_p4 = scmp.ge.s32.totalorder %s23_s21, 4  }
 0x469   :  { %22 = sbr.rel (!%p20_p4) target bundleno = 1 (0x1), region = 106 }

</bundles_post_ra>
